<compile_context>
chip_gen: v6e
topology: v6e:2x2x1
jax: 0.10.0
libtpu: 0.0.40
codegen_flags: <defaults>
</compile_context>

<pallas_src>
import functools

import jax
import jax.numpy as jnp
from jax import lax
from jax.experimental import pallas as pl
from jax.experimental.pallas import tpu as pltpu


def _mlp_kernel(x_ref, w1_ref, b1_ref, w2_ref, b2_ref, o_ref, *, tanh_dtype):
    # x_ref: (tb, 4) batch-major tile DMA'd straight from HBM (contiguous rows).
    # Transpose in-VMEM so the batch rides the lane (fast, 128-wide) axis for
    # both matmuls and the tanh -> lane-dense vregs throughout.
    x = x_ref[...].T                                            # (4, tb)  f32
    h = jnp.dot(w1_ref[...], x,
                preferred_element_type=jnp.float32,
                precision=lax.Precision.HIGHEST)                # (H, tb)
    h = h + b1_ref[...]                                         # lane-broadcast bias
    # Optional bf16 tanh (EUP bf16 path on v6e/v7x, ~2x); f32 by default so the
    # tight reference tolerance holds (and v5e has no bf16 EUP path anyway).
    h = jnp.tanh(h.astype(tanh_dtype)).astype(jnp.float32)
    y = jnp.dot(w2_ref[...], h,
                preferred_element_type=jnp.float32,
                precision=lax.Precision.HIGHEST)                # (2, tb)
    y = y + b2_ref[...]
    # Tiny (2,tb)->(tb,2) flip in-kernel (XLU slack); the output block is then a
    # contiguous row slab of the final (B, 2) array -> no XLA transpose pass.
    o_ref[...] = y.T.astype(o_ref.dtype)


def _round_up(x, m):
    return -(-x // m) * m


def _choose_block(B, H, requested):
    """Pick a batch tile: lane-aligned, VMEM-budgeted, >=2 grid steps when possible."""
    tb = max(128, (int(requested) // 128) * 128)
    # VMEM budget guard (v7x: 64 MiB physical / 32 MiB scoped default).
    # Per row: x + out VMEM windows are lane-padded to 128 f32 and double
    # buffered (2 * 2 * 512 B), plus the (H, tb) f32 hidden activation (4*H B)
    # and slack for transposed temporaries.  Keep total under ~24 MiB.
    per_row = 2 * 2 * 512 + 4 * H + 128
    cap = max(128, ((24 * 1024 * 1024) // per_row) // 128 * 128)
    tb = min(tb, cap)
    # Guarantee >= 2 grid steps for medium/large batches so the "parallel" grid
    # axis can be sharded across both TensorCores on v7x (harmless elsewhere).
    if B >= 256:
        tb = min(tb, _round_up((B + 1) // 2, 128))
    # Tiny batches (e.g. the single-state controller step): one block equal to
    # the full array extent, which is always a legal BlockSpec.
    if B < tb:
        tb = B
    return tb


@functools.partial(jax.jit, static_argnames=("block_b", "tanh_bf16"))
def vz_controller_forward(state, w1, b1, w2, b2, *, block_b=8192, tanh_bf16=False):
    """VZController forward: Linear(4,H) -> Tanh -> Linear(H,2).

    state: (B, 4) f32.  Weights in PyTorch layout: w1 (H,4), b1 (H,),
    w2 (2,H), b2 (2,).  Returns (B, 2) f32.

    tanh_bf16=True is a throughput knob for v6e/v7x (bf16 EUP path); it relaxes
    accuracy to ~1e-2 absolute, so keep False when tight tolerances matter.
    """
    B, F = state.shape
    H = w1.shape[0]
    assert F == 4 and w1.shape == (H, 4) and b1.shape == (H,)
    assert w2.shape == (2, H) and b2.shape == (2,)

    tb = _choose_block(B, H, block_b)
    grid = (pl.cdiv(B, tb),)          # ragged last block handled by Pallas
                                      # (padded reads, masked boundary writes)

    b1c = b1.reshape(H, 1)            # column bias -> broadcasts over lanes
    b2c = b2.reshape(2, 1)
    tanh_dtype = jnp.bfloat16 if tanh_bf16 else jnp.float32
    kernel = functools.partial(_mlp_kernel, tanh_dtype=tanh_dtype)

    return pl.pallas_call(
        kernel,
        out_shape=jax.ShapeDtypeStruct((B, 2), state.dtype),
        grid_spec=pltpu.PrefetchScalarGridSpec(
            num_scalar_prefetch=0,
            grid=grid,
            in_specs=[
                pl.BlockSpec((tb, 4), lambda i: (i, 0)),   # state tile (contiguous rows)
                pl.BlockSpec((H, 4), lambda i: (0, 0)),    # W1, resident in VMEM
                pl.BlockSpec((H, 1), lambda i: (0, 0)),    # b1, resident
                pl.BlockSpec((2, H), lambda i: (0, 0)),    # W2, resident
                pl.BlockSpec((2, 1), lambda i: (0, 0)),    # b2, resident
            ],
            out_specs=pl.BlockSpec((tb, 2), lambda i: (i, 0)),
        ),
        compiler_params=pltpu.CompilerParams(
            dimension_semantics=("parallel",),             # shards steps across TCs on v7x
            vmem_limit_bytes=32 * 1024 * 1024),
    )(state, w1, b1c, w2, b2c)


def init_params(hidden=64, seed=0):
    """Deterministic init mimicking torch.nn.Linear defaults, PyTorch (out, in) layout."""
    k1, k2, k3, k4 = jax.random.split(jax.random.PRNGKey(seed), 4)
    bound1 = 1.0 / jnp.sqrt(4.0)
    bound2 = 1.0 / jnp.sqrt(float(hidden))
    w1 = jax.random.uniform(k1, (hidden, 4), jnp.float32, -bound1, bound1)
    b1 = jax.random.uniform(k2, (hidden,), jnp.float32, -bound1, bound1)
    w2 = jax.random.uniform(k3, (2, hidden), jnp.float32, -bound2, bound2)
    b2 = jax.random.uniform(k4, (2,), jnp.float32, -bound2, bound2)
    return w1, b1, w2, b2


if __name__ == "__main__":
    hidden = 32          # small hidden size for the synthetic example
    batch = 8            # each state = [z_re, z_im, v_now, v_target]

    key = jax.random.PRNGKey(0)
    state = jax.random.normal(key, (batch, 4), jnp.float32)
    w1, b1, w2, b2 = init_params(hidden=hidden, seed=0)

    def reference(s):
        hh = jnp.tanh(jnp.dot(s, w1.T, precision=lax.Precision.HIGHEST) + b1)
        return jnp.dot(hh, w2.T, precision=lax.Precision.HIGHEST) + b2

    # Small-batch path (single block equal to the batch).
    out = jax.block_until_ready(vz_controller_forward(state, w1, b1, w2, b2))
    ref = reference(state)
    assert out.shape == (batch, 2)
    assert jnp.allclose(out, ref, atol=2e-5, rtol=1e-5), "mismatch vs reference"

    # Multi-block + ragged-tail path (grid > 1, batch not a multiple of the tile).
    batch2 = 300
    state2 = jax.random.normal(jax.random.PRNGKey(1), (batch2, 4), jnp.float32)
    out2 = jax.block_until_ready(
        vz_controller_forward(state2, w1, b1, w2, b2, block_b=128))
    ref2 = reference(state2)
    assert out2.shape == (batch2, 2)
    assert jnp.allclose(out2, ref2, atol=2e-5, rtol=1e-5), "mismatch vs reference (multi-block)"

    # bf16-tanh throughput knob (v6e/v7x EUP bf16 path) -- looser tolerance by design.
    out3 = jax.block_until_ready(
        vz_controller_forward(state2, w1, b1, w2, b2, tanh_bf16=True))
    assert out3.shape == (batch2, 2)
    assert jnp.allclose(out3, ref2, atol=5e-2, rtol=0.0), "mismatch vs reference (bf16 tanh)"

    # TODO(synk): run_VZController's Adam optimization loop is host-side training
    # logic (autograd + optimizer), not a forward-pass kernel; only forward() is
    # implemented here.
    print("KERNEL_OK")
</pallas_src>

<mosaic_0001>
module attributes {stable_mosaic.version = 11 : i64} {
  func.func @_mlp_kernel(%arg0: i32, %arg1: memref<8x4xf32, #tpu.memory_space<vmem>>, %arg2: memref<32x4xf32, #tpu.memory_space<vmem>>, %arg3: memref<32x1xf32, #tpu.memory_space<vmem>>, %arg4: memref<2x32xf32, #tpu.memory_space<vmem>>, %arg5: memref<2x1xf32, #tpu.memory_space<vmem>>, %arg6: memref<8x2xf32, #tpu.memory_space<vmem>>) attributes {dimension_semantics = [#tpu.dimension_semantics<parallel>], iteration_bounds = array<i64: 1>, scalar_prefetch = 0 : i64, scratch_operands = 0 : i64, tpu.core_type = #tpu.core_type<tc>, window_params = [{transform_indices = @transform_0, window_bounds = array<i64: 8, 4>}, {pipeline_mode = #tpu.pipeline_mode<synchronous>, transform_indices = @transform_1, window_bounds = array<i64: 32, 4>}, {pipeline_mode = #tpu.pipeline_mode<synchronous>, transform_indices = @transform_2, window_bounds = array<i64: 32, 1>}, {pipeline_mode = #tpu.pipeline_mode<synchronous>, transform_indices = @transform_3, window_bounds = array<i64: 2, 32>}, {pipeline_mode = #tpu.pipeline_mode<synchronous>, transform_indices = @transform_4, window_bounds = array<i64: 2, 1>}, {transform_indices = @transform_5, window_bounds = array<i64: 8, 2>}]} {
    %c0 = arith.constant 0 : index
    %c0_0 = arith.constant 0 : index
    %0 = vector.load %arg1[%c0, %c0_0] : memref<8x4xf32, #tpu.memory_space<vmem>>, vector<8x4xf32>
    %1 = tpu.transpose %0, [1, 0] : vector<8x4xf32> -> vector<4x8xf32>
    %c0_1 = arith.constant 0 : index
    %c0_2 = arith.constant 0 : index
    %2 = vector.load %arg2[%c0_1, %c0_2] : memref<32x4xf32, #tpu.memory_space<vmem>>, vector<32x4xf32>
    %cst = arith.constant dense<0.000000e+00> : vector<32x8xf32>
    %3 = tpu.matmul %2, %1, %cst {dimension_numbers = #tpu.dot_dimension_numbers<[1], [0], [0], [1], [0, 0, 1, 1], [], []>, precision = #tpu.contract_precision<fp32>} : vector<32x4xf32>, vector<4x8xf32>, vector<32x8xf32> -> vector<32x8xf32>
    %c0_3 = arith.constant 0 : index
    %c0_4 = arith.constant 0 : index
    %4 = vector.load %arg3[%c0_3, %c0_4] : memref<32x1xf32, #tpu.memory_space<vmem>>, vector<32x1xf32>
    %5 = vector.broadcast %4 : vector<32x1xf32> to vector<32x8xf32>
    %6 = arith.addf %3, %5 : vector<32x8xf32>
    %7 = math.tanh %6 : vector<32x8xf32>
    %c0_5 = arith.constant 0 : index
    %c0_6 = arith.constant 0 : index
    %8 = vector.load %arg4[%c0_5, %c0_6] : memref<2x32xf32, #tpu.memory_space<vmem>>, vector<2x32xf32>
    %cst_7 = arith.constant dense<0.000000e+00> : vector<2x8xf32>
    %9 = tpu.matmul %8, %7, %cst_7 {dimension_numbers = #tpu.dot_dimension_numbers<[1], [0], [0], [1], [0, 0, 1, 1], [], []>, precision = #tpu.contract_precision<fp32>} : vector<2x32xf32>, vector<32x8xf32>, vector<2x8xf32> -> vector<2x8xf32>
    %c0_8 = arith.constant 0 : index
    %c0_9 = arith.constant 0 : index
    %10 = vector.load %arg5[%c0_8, %c0_9] : memref<2x1xf32, #tpu.memory_space<vmem>>, vector<2x1xf32>
    %11 = vector.broadcast %10 : vector<2x1xf32> to vector<2x8xf32>
    %12 = arith.addf %9, %11 : vector<2x8xf32>
    %13 = tpu.transpose %12, [1, 0] : vector<2x8xf32> -> vector<8x2xf32>
    %c0_10 = arith.constant 0 : index
    %c0_11 = arith.constant 0 : index
    %14 = vector.load %arg6[%c0_10, %c0_11] : memref<8x2xf32, #tpu.memory_space<vmem>>, vector<8x2xf32>
    tpu.vector_store %arg6[%c0_10, %c0_11], %13 {strides = array<i32>} : memref<8x2xf32, #tpu.memory_space<vmem>>, vector<8x2xf32>,
    return
  }
  func.func @transform_0(%arg0: i32) -> (i32, i32) {
    %c0_i32 = arith.constant 0 : i32
    %c0_i32_0 = arith.constant 0 : i32
    return %arg0, %c0_i32 : i32, i32
  }
  func.func @transform_1(%arg0: i32) -> (i32, i32) {
    %c0_i32 = arith.constant 0 : i32
    %c0_i32_0 = arith.constant 0 : i32
    %c0_i32_1 = arith.constant 0 : i32
    return %c0_i32, %c0_i32_0 : i32, i32
  }
  func.func @transform_2(%arg0: i32) -> (i32, i32) {
    %c0_i32 = arith.constant 0 : i32
    %c0_i32_0 = arith.constant 0 : i32
    %c0_i32_1 = arith.constant 0 : i32
    return %c0_i32, %c0_i32_0 : i32, i32
  }
  func.func @transform_3(%arg0: i32) -> (i32, i32) {
    %c0_i32 = arith.constant 0 : i32
    %c0_i32_0 = arith.constant 0 : i32
    %c0_i32_1 = arith.constant 0 : i32
    return %c0_i32, %c0_i32_0 : i32, i32
  }
  func.func @transform_4(%arg0: i32) -> (i32, i32) {
    %c0_i32 = arith.constant 0 : i32
    %c0_i32_0 = arith.constant 0 : i32
    %c0_i32_1 = arith.constant 0 : i32
    return %c0_i32, %c0_i32_0 : i32, i32
  }
  func.func @transform_5(%arg0: i32) -> (i32, i32) {
    %c0_i32 = arith.constant 0 : i32
    %c0_i32_0 = arith.constant 0 : i32
    return %arg0, %c0_i32 : i32, i32
  }
}

</mosaic_0001>

<bundles_post_ra>
// kernel: vz_controller_forward.1
= control target key start
LH: loop header
LB: loop body
LE: loop exit
PB: predicated region body
PF: predicated region fallthrough
CT: control target
= control target key end

     0   :  { %vm49_vm0 = vcmask 31744   ;;  %v1365_v3 = vmov 0   ;;  %v1366_v41 = vmov 0.0   ;;  %vm1367_vm1 = vmmov 0   ;;  %s1532_s0 = inlined_call_operand.vmem [shape: f32[8,4], index: 0, kind: input, shape index: {}]   ;;  %s1533_s1 = inlined_call_operand.vmem [shape: f32[32,4], index: 1, kind: input, shape index: {}]   ;;  %s1534_s2 = inlined_call_operand.vmem [shape: f32[32,1], index: 2, kind: input, shape index: {}]   ;;  %s1535_s4 = inlined_call_operand.vmem [shape: f32[2,1], index: 4, kind: input, shape index: {}]   ;;  %s1536_s3 = inlined_call_operand.vmem [shape: f32[2,32], index: 3, kind: input, shape index: {}]   ;;  %s1537_s5 = inlined_call_operand.vmem [shape: f32[8,2], index: 5, kind: output, shape index: {}]  }
   0x1   :  { %v20_v0 = vld [vmem:[%s1532_s0] sm:$0xff]  ;;  %v22_v2 = vld [vmem:[%s1533_s1 + $0x8] sm:$0xff]  ;;  %1356 = vset.pattern.permute.xlu1 %v1365_v3  ;;  %1355 = vset.pattern.permute.xlu0 %v1365_v3  ;;  %v23_v7 = vld [vmem:[%s1533_s1 + $0x10] sm:$0xff]  ;;  %vm651_vm2 = vcmask 261120   ;;  %vm1172_vm3 = vcmask 15360  }
   0x2   :  { %v21_v1 = vld [vmem:[%s1533_s1] sm:$0xff]  ;;  %v63_v4 = vsel %vm49_vm0, %v20_v0, 0  ;;  %v54_v6 = vsel %vm49_vm0, %v22_v2, 0  ;;  %v24_v8 = vld [vmem:[%s1533_s1 + $0x18] sm:$0xff]  ;;  %v26_v9 = vld [vmem:[%s1534_s2 + $0x8] sm:$0xff]  ;;  %v57_v13 = vsel %vm49_vm0, %v23_v7, 0 }
   0x3   :  { %v51_v5 = vsel %vm49_vm0, %v21_v1, 0  ;;  %v96_v10 = vand.u32 4294901760, %v63_v4  ;;  %v1421_v12 = vand.u32 4294901760, %v54_v6  ;;  %36 = vperm.xlu1 %1356, %v26_v9   ;;  %v28_v14 = vld [vmem:[%s1534_s2 + $0x18] sm:$0xff]  ;;  %v1427_v15 = vand.u32 4294901760, %v57_v13  ;;  %v25_v17 = vld [vmem:[%s1534_s2] sm:$0xff] }
   0x4   :  { %v1419_v11 = vand.u32 4294901760, %v51_v5  ;;  %v60_v16 = vsel %vm49_vm0, %v24_v8, 0  ;;  %46 = vperm.xlu0 %1355, %v28_v14   ;;  %v27_v22 = vld [vmem:[%s1534_s2 + $0x10] sm:$0xff]  ;;  %v645_v33 = vld [vmem:[%s1535_s4] sm:$0x3] }
   0x5   :  { %1238 = vmatprep.subr.mxu0 %v96_v10  ;;  %v203_v19 = vsub.f32 %v63_v4, %v96_v10  ;;  %v142_v20 = vsub.f32 %v54_v6, %v1421_v12  ;;  %v161_v21 = vand.u32 4294901760, %v60_v16  ;;  %v152_v23 = vsub.f32 %v57_v13, %v1427_v15 }
   0x6   :  { %v132_v18 = vsub.f32 %v51_v5, %v1419_v11  ;;  %1248 = vmatprep.mubr.f32.mxu1 %v1419_v11  ;;  %1239 = vmatpush3.xpose.msra.mxu0 %v96_v10 }
   0x7   :  { %v204_v25 = vand.u32 4294901760, %v203_v19  ;;  %v143_v26 = vand.u32 4294901760, %v142_v20  ;;  %1254 = vmatprep.subr.mxu0 %v203_v19  ;;  %v162_v27 = vsub.f32 %v60_v16, %v161_v21  ;;  %31 = vperm.xlu1 %1356, %v25_v17   ;;  %v153_v28 = vand.u32 4294901760, %v152_v23 }
   0x8   :  { %v133_v24 = vand.u32 4294901760, %v132_v18  ;;  %41 = vperm.xlu0 %1355, %v27_v22  }
   0x9   :  { %v205_v30 = vsub.f32 %v203_v19, %v204_v25  ;;  %v144_v31 = vsub.f32 %v142_v20, %v143_v26  ;;  %v163_v32 = vand.u32 4294901760, %v162_v27  ;;  %v154_v34 = vsub.f32 %v152_v23, %v153_v28 }
   0xa   :  { %v134_v29 = vsub.f32 %v132_v18, %v133_v24 }
   0xb   :  { %v206_v36 = vand.u32 4294901760, %v205_v30  ;;  %v145_v37 = vand.u32 4294901760, %v144_v31  ;;  %v164_v38 = vsub.f32 %v162_v27, %v163_v32  ;;  %v155_v39 = vand.u32 4294901760, %v154_v34 }
   0xc   :  { %v135_v35 = vand.u32 4294901760, %v134_v29  ;;  %648 = vperm.xlu0 %1355, %v645_v33  }
   0xd   :  { %1246 = vmatprep.subr.mxu1 %v206_v36  ;;  %v165_v40 = vand.u32 4294901760, %v164_v38 }
   0xe   :  { %1240 = vmatprep.mubr.f32.mxu0 %v135_v35  ;;  %1247 = vmatpush3.xpose.msra.mxu1 %v206_v36 }
   0xf   :  { %1241 = vmatmul.mubr.f32.vlgmr.msra.gmra.mxu0 %v145_v37  ;;  %1262 = vmatprep.subr.mxu1 %v96_v10 }
  0x10   :  { %1255 = vmatpush3.xpose.msra.mxu0 %v203_v19  ;;  %1243 = vmatprep.mubr.f32.mxu0 %v155_v39 }
  0x11   :  { %1270 = vmatprep.subr.mxu0 %v204_v25  ;;  %1249 = vmatmul.mubr.f32.vlgmr.msra.gmra.mxu1 %v1421_v12 }
  0x12   :  { %1263 = vmatpush3.xpose.msra.mxu1 %v96_v10  ;;  %1251 = vmatprep.mubr.f32.mxu1 %v1427_v15 }
  0x13   :  { %1244 = vmatmul.mubr.f32.gmra.mxu0 %v165_v40  ;;  %1278 = vmatprep.subr.mxu1 %v96_v10 }
  0x14   :  { %1256 = vmatprep.mubr.f32.mxu0 %v132_v18 }
  0x15   :  { %1252 = vmatmul.mubr.f32.gmra.mxu1 %v161_v21 }
  0x16   :  { %1264 = vmatprep.mubr.f32.mxu1 %v133_v24 }
  0x17   :  { %1257 = vmatmul.mubr.f32.vlgmr.msra.gmra.mxu0 %v142_v20 }
  0x18   :  { %1271 = vmatpush3.xpose.msra.mxu0 %v204_v25  ;;  %1259 = vmatprep.mubr.f32.mxu0 %v152_v23 }
  0x19   :  { %1265 = vmatmul.mubr.f32.vlgmr.msra.gmra.mxu1 %v143_v26  ;;  %1286 = vmatprep.subr.mxu0 %v1366_v41 }
  0x1a   :  { %1279 = vmatpush3.xpose.msra.mxu1 %v96_v10  ;;  %1267 = vmatprep.mubr.f32.mxu1 %v153_v28 }
  0x1b   :  { %1260 = vmatmul.mubr.f32.gmra.mxu0 %v162_v27  ;;  %1297 = vmatprep.subr.mxu1 %v1366_v41  ;;  %v644_v27 = vld [vmem:[%s1536_s3] sm:$0x3] }
  0x1c   :  { %1272 = vmatprep.mubr.f32.mxu0 %v1419_v11  ;;  %v653_v31 = vsel %vm651_vm2, %v644_v27, 0 }
  0x1d   :  { %1268 = vmatmul.mubr.f32.gmra.mxu1 %v163_v32  ;;  %v1460_v32 = vand.u32 4294901760, %v653_v31 }
  0x1e   :  { %1280 = vmatprep.mubr.f32.mxu1 %v1419_v11 }
  0x1f   :  { %1273 = vmatmul.mubr.f32.vlgmr.msra.gmra.mxu0 %v1421_v12  ;;  %v1463_v33 = vsub.f32 %v653_v31, %v1460_v32 }
  0x20   :  { %1275 = vmatprep.mubr.f32.mxu0 %v1427_v15 }
  0x21   :  { %1281 = vmatmul.mubr.f32.vlgmr.msra.gmra.mxu1 %v1421_v12  ;;  %v726_v37 = vand.u32 4294901760, %v1463_v33 }
  0x22   :  { %1283 = vmatprep.mubr.f32.mxu1 %v1427_v15 }
  0x23   :  { %1276 = vmatmul.mubr.f32.gmra.mxu0 %v161_v21 }
  0x24   :  { %1294 = vmatprep.mubr.msk.f32.mxu0 %vm1367_vm1, %v1366_v41 }
  0x25   :  { %1284 = vmatmul.mubr.f32.gmra.mxu1 %v161_v21 }
  0x26   :  { %1305 = vmatprep.mubr.msk.f32.mxu1 %vm1367_vm1, %v1366_v41 }
  0x7e   :  { %v37_v42 = vpop.permute.xlu1 %36 }
  0x7f   :  { %v47_v44 = vpop.permute.xlu0 %46 }
  0x82   :  { %v32_v47 = vpop.permute.xlu1 %31 }
  0x83   :  { %v42_v54 = vpop.permute.xlu0 %41 }
  0xcf   :  { %v1242_v43 = vpop.f32.mrf.mxu0 }
  0xd0   :  { %v148_v49 = vadd.f32 %v1242_v43, %v37_v42 }
  0xd1   :  { %v137_v45 = vpop.f32.mrf.mxu0  ;;  %v1250_v46 = vpop.f32.mrf.mxu1 }
  0xd2   :  { %v138_v52 = vadd.f32 %v137_v45, %v32_v47  ;;  %v250_v56 = vadd.f32 %v1250_v46, %v148_v49 }
  0xd3   :  { %v1245_v48 = vpop.f32.mrf.mxu0  ;;  %v243_v50 = vpop.f32.mrf.mxu1 }
  0xd4   :  { %v168_v57 = vadd.f32 %v1245_v48, %v47_v44  ;;  %v244_v60 = vadd.f32 %v243_v50, %v138_v52  ;;  %v727_v44 = vsub.f32 %v1463_v33, %v726_v37 }
  0xd5   :  { %v157_v51 = vpop.f32.mrf.mxu0  ;;  %v1253_v53 = vpop.f32.mrf.mxu1 }
  0xd6   :  { %v158_v61 = vadd.f32 %v157_v51, %v42_v54  ;;  %v262_v1 = vadd.f32 %v1253_v53, %v168_v57  ;;  %v728_v51 = vand.u32 4294901760, %v727_v44 }
  0xd7   :  { %v1258_v55 = vpop.f32.mrf.mxu0  ;;  %v255_v58 = vpop.f32.mrf.mxu1 }
  0xd8   :  { %v343_v62 = vadd.f32 %v1258_v55, %v250_v56  ;;  %v256_v5 = vadd.f32 %v255_v58, %v158_v61 }
  0xd9   :  { %v335_v59 = vpop.f32.mrf.mxu0  ;;  %v1266_v63 = vpop.f32.mrf.mxu1 }
  0xda   :  { %v336_v2 = vadd.f32 %v335_v59, %v244_v60  ;;  %v439_v6 = vadd.f32 %v1266_v63, %v343_v62 }
  0xdb   :  { %v1261_v0 = vpop.f32.mrf.mxu0  ;;  %v430_v3 = vpop.f32.mrf.mxu1 }
  0xdc   :  { %v357_v7 = vadd.f32 %v1261_v0, %v262_v1  ;;  %v431_v10 = vadd.f32 %v430_v3, %v336_v2  ;;  %v649_v3 = vpop.permute.xlu0 %648 }
  0xdd   :  { %v349_v4 = vpop.f32.mrf.mxu0  ;;  %v1269_v8 = vpop.f32.mrf.mxu1 }
  0xde   :  { %v350_v11 = vadd.f32 %v349_v4, %v256_v5  ;;  %v455_v15 = vadd.f32 %v1269_v8, %v357_v7 }
  0xdf   :  { %v1274_v9 = vpop.f32.mrf.mxu0  ;;  %v446_v13 = vpop.f32.mrf.mxu1 }
  0xe0   :  { %v535_v12 = vadd.f32 %v1274_v9, %v439_v6  ;;  %v447_v20 = vadd.f32 %v446_v13, %v350_v11 }
  0xe1   :  { %v528_v14 = vpop.f32.mrf.mxu0  ;;  %v1282_v17 = vpop.f32.mrf.mxu1 }
  0xe2   :  { %v529_v16 = vadd.f32 %v528_v14, %v431_v10  ;;  %v625_v18 = vadd.f32 %v1282_v17, %v535_v12 }
  0xe3   :  { %v1277_v19 = vpop.f32.mrf.mxu0  ;;  %v618_v22 = vpop.f32.mrf.mxu1 }
  0xe4   :  { %v547_v21 = vadd.f32 %v1277_v19, %v455_v15  ;;  %1357 = vtanh.f32 %v625_v18  ;;  %v619_v23 = vadd.f32 %v618_v22, %v529_v16 }
  0xe5   :  { %v540_v24 = vpop.f32.mrf.mxu0  ;;  %v1285_v26 = vpop.f32.mrf.mxu1 }
  0xe6   :  { %v541_v25 = vadd.f32 %v540_v24, %v447_v20  ;;  %1359 = vtanh.f32 %v619_v23  ;;  %v637_v28 = vadd.f32 %v1285_v26, %v547_v21 }
  0xe7   :  { %v630_v29 = vpop.f32.mrf.mxu1 }
  0xe8   :  { %1361 = vtanh.f32 %v637_v28  ;;  %v631_v30 = vadd.f32 %v630_v29, %v541_v25 }
  0xea   :  { %1363 = vtanh.f32 %v631_v30 }
  0xf1   :  { %v1358_v34 = vpop.eup %1357 }
  0xf2   :  { %v1465_v35 = vand.u32 4294901760, %v1358_v34 }
  0xf3   :  { %v1360_v36 = vpop.eup %1359 }
  0xf4   :  { %v1468_v38 = vand.u32 4294901760, %v1360_v36  ;;  %v774_v42 = vsub.f32 %v1358_v34, %v1465_v35 }
  0xf5   :  { %v1362_v39 = vpop.eup %1361 }
  0xf6   :  { %v1470_v40 = vand.u32 4294901760, %v1362_v39  ;;  %v781_v47 = vsub.f32 %v1360_v36, %v1468_v38  ;;  %v775_v50 = vand.u32 4294901760, %v774_v42 }
  0xf7   :  { %v1364_v43 = vpop.eup %1363 }
  0xf8   :  { %1287 = vmatpush3.msra.mxu0 %v1470_v40  ;;  %v1477_v45 = vand.u32 4294901760, %v1364_v43  ;;  %v760_v46 = vsub.f32 %v1362_v39, %v1470_v40  ;;  %v782_v54 = vand.u32 4294901760, %v781_v47  ;;  %v776_v57 = vsub.f32 %v774_v42, %v775_v50 }
  0xf9   :  { %1288 = vmatprep.subr.mxu0 %v1366_v41 }
  0xfa   :  { %1289 = vmatpush3.msra.mxu0 %v1477_v45  ;;  %v761_v48 = vand.u32 4294901760, %v760_v46  ;;  %v767_v49 = vsub.f32 %v1364_v43, %v1477_v45  ;;  %v783_v59 = vsub.f32 %v781_v47, %v782_v54  ;;  %v777_v60 = vand.u32 4294901760, %v776_v57 }
  0xfb   :  { %1290 = vmatprep.subr.mxu0 %v1366_v41 }
  0xfc   :  { %1291 = vmatpush3.msra.mxu0 %v1465_v35  ;;  %v762_v52 = vsub.f32 %v760_v46, %v761_v48  ;;  %v768_v53 = vand.u32 4294901760, %v767_v49  ;;  %v784_v61 = vand.u32 4294901760, %v783_v59 }
  0xfd   :  { %1292 = vmatprep.subr.mxu0 %v1366_v41 }
  0xfe   :  { %1293 = vmatpush3.msra.mxu0 %v1468_v38  ;;  %v763_v55 = vand.u32 4294901760, %v762_v52  ;;  %v769_v56 = vsub.f32 %v767_v49, %v768_v53 }
  0xff   :  { %1295 = vmatmul.mubr.f32.vlgmr.msra.gmra.mxu0 %v728_v51  ;;  %1308 = vmatprep.subr.mxu0 %v1366_v41 }
 0x100   :  { %1298 = vmatpush3.msra.mxu1 %v763_v55  ;;  %1309 = vmatpush3.msra.mxu0 %v760_v46  ;;  %v770_v58 = vand.u32 4294901760, %v769_v56 }
 0x101   :  { %1299 = vmatprep.subr.mxu1 %v1366_v41  ;;  %1310 = vmatprep.subr.mxu0 %v1366_v41 }
 0x102   :  { %1300 = vmatpush3.msra.mxu1 %v770_v58  ;;  %1311 = vmatpush3.msra.mxu0 %v767_v49 }
 0x103   :  { %1301 = vmatprep.subr.mxu1 %v1366_v41  ;;  %1312 = vmatprep.subr.mxu0 %v1366_v41 }
 0x104   :  { %1302 = vmatpush3.msra.mxu1 %v777_v60  ;;  %1313 = vmatpush3.msra.mxu0 %v774_v42 }
 0x105   :  { %1303 = vmatprep.subr.mxu1 %v1366_v41  ;;  %1314 = vmatprep.subr.mxu0 %v1366_v41 }
 0x106   :  { %1304 = vmatpush3.msra.mxu1 %v784_v61  ;;  %1315 = vmatpush3.msra.mxu0 %v781_v47 }
 0x107   :  { %1306 = vmatmul.mubr.f32.vlgmr.msra.gmra.mxu1 %v1460_v32  ;;  %1316 = vmatprep.mubr.msk.f32.mxu0 %vm1367_vm1, %v1366_v41 }
 0x108   :  { %1319 = vmatprep.subr.mxu1 %v1366_v41  ;;  %1330 = vmatprep.subr.mxu0 %v1366_v41 }
 0x109   :  { %1317 = vmatmul.mubr.f32.vlgmr.msra.gmra.mxu0 %v1463_v33  ;;  %1320 = vmatpush3.msra.mxu1 %v1470_v40 }
 0x10a   :  { %1331 = vmatpush3.msra.mxu0 %v761_v48  ;;  %1321 = vmatprep.subr.mxu1 %v1366_v41 }
 0x10b   :  { %1332 = vmatprep.subr.mxu0 %v1366_v41  ;;  %1322 = vmatpush3.msra.mxu1 %v1477_v45 }
 0x10c   :  { %1333 = vmatpush3.msra.mxu0 %v768_v53  ;;  %1323 = vmatprep.subr.mxu1 %v1366_v41 }
 0x10d   :  { %1334 = vmatprep.subr.mxu0 %v1366_v41  ;;  %1324 = vmatpush3.msra.mxu1 %v1465_v35 }
 0x10e   :  { %1335 = vmatpush3.msra.mxu0 %v775_v50  ;;  %1325 = vmatprep.subr.mxu1 %v1366_v41 }
 0x10f   :  { %1336 = vmatprep.subr.mxu0 %v1366_v41  ;;  %1326 = vmatpush3.msra.mxu1 %v1468_v38 }
 0x110   :  { %1327 = vmatprep.mubr.msk.f32.mxu1 %vm1367_vm1, %v1366_v41  ;;  %1337 = vmatpush3.msra.mxu0 %v782_v54 }
 0x111   :  { %1328 = vmatmul.mubr.f32.vlgmr.msra.gmra.mxu1 %v726_v37  ;;  %1341 = vmatprep.subr.mxu1 %v1366_v41 }
 0x112   :  { %1338 = vmatprep.mubr.msk.f32.mxu0 %vm1367_vm1, %v1366_v41  ;;  %1342 = vmatpush3.msra.mxu1 %v1470_v40 }
 0x113   :  { %1339 = vmatmul.mubr.f32.vlgmr.msra.gmra.mxu0 %v1460_v32  ;;  %1343 = vmatprep.subr.mxu1 %v1366_v41 }
 0x114   :  { %1344 = vmatpush3.msra.mxu1 %v1477_v45  ;;  %1349 = vmatprep.mubr.msk.f32.mxu1 %vm1367_vm1, %v1366_v41 }
 0x115   :  { %1345 = vmatprep.subr.mxu1 %v1366_v41 }
 0x116   :  { %1346 = vmatpush3.msra.mxu1 %v1465_v35 }
 0x117   :  { %1347 = vmatprep.subr.mxu1 %v1366_v41 }
 0x118   :  { %1348 = vmatpush3.msra.mxu1 %v1468_v38 }
 0x119   :  { %1350 = vmatmul.mubr.f32.vlgmr.msra.gmra.mxu1 %v1460_v32 }
 0x1bf   :  { %v730_v62 = vpop.f32.mrf.mxu0 }
 0x1c0   :  { %v731_v5 = vadd.f32 %v730_v62, %v649_v3 }
 0x1c1   :  { %v1296_v63 = vpop.f32.mrf.mxu0 }
 0x1c7   :  { %v821_v0 = vpop.f32.mrf.mxu1 }
 0x1c8   :  { %v822_v6 = vadd.f32 %v821_v0, %v731_v5 }
 0x1c9   :  { %v1307_v1 = vpop.f32.mrf.mxu1  ;;  %v901_v2 = vpop.f32.mrf.mxu0 }
 0x1ca   :  { %v902_v8 = vadd.f32 %v901_v2, %v822_v6 }
 0x1cb   :  { %v1318_v4 = vpop.f32.mrf.mxu0 }
 0x1d1   :  { %v978_v7 = vpop.f32.mrf.mxu1 }
 0x1d2   :  { %v979_v11 = vadd.f32 %v978_v7, %v902_v8 }
 0x1d3   :  { %v1329_v9 = vpop.f32.mrf.mxu1  ;;  %v1061_v10 = vpop.f32.mrf.mxu0 }
 0x1d4   :  { %v1062_v41 = vadd.f32 %v1061_v10, %v979_v11 }
 0x1d5   :  { %v1340_v12 = vpop.f32.mrf.mxu0 }
 0x1d9   :  { %v1136_v13 = vpop.f32.mrf.mxu1 }
 0x1da   :  { %v1137_v14 = vadd.f32 %v1136_v13, %v1062_v41 }
 0x1db   :  { %v1351_v15 = vpop.f32.mrf.mxu1 }
 0x1dc   :  { %1140 = vxpose.xlu1.b32.start.end [1/1] (short) (narrow) %v1137_v14, 8 }
 0x258   :  { %v1156_v16 = vpop.trf.xlu1 }
 0x259   :  { %1173 = vst.msk [vmem:[%s1537_s5] sm:$0xff] %vm1172_vm3, %v1156_v16 }

</bundles_post_ra>
